<compile_context>
chip_gen: v7x
topology: tpu7x:2x2x1
jax: 0.10.0
libtpu: 0.0.40
codegen_flags: <defaults>
</compile_context>

<pallas_src>
import functools
import numpy as np
import jax
import jax.numpy as jnp
from jax.experimental import pallas as pl
from jax.experimental.pallas import tpu as pltpu

VAR_X, VAR_Y, VAR_W, VAR_H = 0.1, 0.1, 0.2, 0.2


def _smooth_l1(d):
    # Branch-free Huber (beta = 1):  min(|d|,1)=m  ->  0.5*m*m + (|d| - m)
    ad = jnp.abs(d)
    m = jnp.minimum(ad, 1.0)
    return 0.5 * m * m + (ad - m)


def _ssd_main_kernel(anc_ref, pd_ref, cf_ref, gt_ref, out_ref, *, jaccard_thr):
    # ---- per-anchor rows [1, TA] (lane-dense)
    a_xmin = anc_ref[0:1, :]; a_ymin = anc_ref[1:2, :]
    a_xmax = anc_ref[2:3, :]; a_ymax = anc_ref[3:4, :]
    area_a = (a_xmax - a_xmin) * (a_ymax - a_ymin)            # [1, TA]

    # ---- per-GT columns [GP, 1]
    g_xmin = gt_ref[:, 0:1]; g_ymin = gt_ref[:, 1:2]
    g_xmax = gt_ref[:, 2:3]; g_ymax = gt_ref[:, 3:4]
    area_g = (g_xmax - g_xmin) * (g_ymax - g_ymin)            # [GP, 1]

    # ---- [GP, TA] divide-free IoU >= threshold test
    iw = jnp.maximum(jnp.minimum(a_xmax, g_xmax) - jnp.maximum(a_xmin, g_xmin), 0.0)
    ih = jnp.maximum(jnp.minimum(a_ymax, g_ymax) - jnp.maximum(a_ymin, g_ymin), 0.0)
    inter = iw * ih
    # iou >= thr  <=>  inter >= thr * union  (zero-corner padded GT rows have
    # inter = 0, area_g = 0 -> can never be positive)
    pos = (inter >= jaccard_thr * (area_a + area_g - inter)).astype(jnp.float32)
    pos_cnt = jnp.sum(pos, axis=0, keepdims=True)             # [1, TA]

    cf_person = cf_ref[0:1, :]
    cf_bg = cf_ref[1:2, :]

    # Defaults for every anchor of the tile; the loc / pos-conf rows are
    # overwritten below only when the tile actually contains a positive match.
    out_ref[0:1, :] = jnp.zeros_like(pos_cnt)                          # loc_sum
    out_ref[1:2, :] = pos_cnt                                          # pos count
    out_ref[2:3, :] = jnp.zeros_like(pos_cnt)                          # pos conf loss
    out_ref[3:4, :] = jnp.where(pos_cnt == 0.0, cf_bg, jnp.inf)        # neg-match bg cf

    # ---- localization SmoothL1 + positive conf loss: skipped on tiles with
    #      zero positives (the common case -> majority of pair work removed).
    @pl.when(jnp.sum(pos_cnt) > 0.0)
    def _():
        acx = anc_ref[4:5, :]; acy = anc_ref[5:6, :]
        aw = anc_ref[6:7, :];  ah = anc_ref[7:8, :]
        inv_aw_vx = 1.0 / (aw * VAR_X)                        # per-anchor recips
        inv_ah_vy = 1.0 / (ah * VAR_Y)
        log_aw = jnp.log(aw) * (1.0 / VAR_W)                  # per-anchor logs
        log_ah = jnp.log(ah) * (1.0 / VAR_H)

        pd_cx = pd_ref[0:1, :]; pd_cy = pd_ref[1:2, :]
        pd_w = pd_ref[2:3, :];  pd_h = pd_ref[3:4, :]

        gcx = gt_ref[:, 4:5];    gcy = gt_ref[:, 5:6]
        log_gw = gt_ref[:, 6:7]; log_gh = gt_ref[:, 7:8]      # pre-scaled by 1/VAR

        ghat_cx = (gcx - acx) * inv_aw_vx
        ghat_cy = (gcy - acy) * inv_ah_vy
        ghat_w = log_gw - log_aw
        ghat_h = log_gh - log_ah
        loc = (_smooth_l1(pd_cx - ghat_cx) + _smooth_l1(pd_cy - ghat_cy)
               + _smooth_l1(pd_w - ghat_w) + _smooth_l1(pd_h - ghat_h))
        out_ref[0:1, :] = jnp.sum(pos * loc, axis=0, keepdims=True)
        out_ref[2:3, :] = pos_cnt * (-jnp.log(cf_person))


def _neg_mine_kernel(k_ref, maxcf_ref, cf_ref, out_ref):
    # One pass over the (bounded) sorted background CF prefix, evaluating BOTH
    # mining variants:
    #   A: idx < kA  and cf < max_bg_cf      (positives exist)
    #   B: idx < kB  and cf < +inf           (no positives; kB = min_neg)
    kA = k_ref[0]
    kB = k_ref[1]
    maxA = maxcf_ref[0]
    maxB = maxcf_ref[1]
    vals = cf_ref[...]                                        # [1, K] ascending
    idx = jax.lax.broadcasted_iota(jnp.int32, vals.shape, 1)
    selA = jnp.logical_and(idx < kA, vals < maxA)
    selB = jnp.logical_and(idx < kB, vals < maxB)
    nl = -jnp.log(jnp.where(jnp.logical_or(selA, selB), vals, 1.0))
    out_ref[0] = jnp.sum(jnp.where(selA, nl, 0.0))
    out_ref[1] = jnp.sum(selA.astype(jnp.float32))
    out_ref[2] = jnp.sum(jnp.where(selB, nl, 0.0))
    out_ref[3] = jnp.sum(selB.astype(jnp.float32))


def _run_main(anc_feat, pred_t, cf_t, gt_feat, jaccard_thr, ta, gp):
    A_pad = anc_feat.shape[1]
    kernel = functools.partial(_ssd_main_kernel, jaccard_thr=float(jaccard_thr))
    return pl.pallas_call(
        kernel,
        out_shape=jax.ShapeDtypeStruct((4, A_pad), jnp.float32),
        grid=(A_pad // ta,),
        in_specs=[pl.BlockSpec((8, ta), lambda i: (0, i)),     # anchor features
                  pl.BlockSpec((4, ta), lambda i: (0, i)),     # pred deltas (T)
                  pl.BlockSpec((2, ta), lambda i: (0, i)),     # pred conf (T)
                  pl.BlockSpec((gp, 8), lambda i: (0, 0))],    # GT features (const)
        out_specs=pl.BlockSpec((4, ta), lambda i: (0, i)),     # lane-dense rows
        compiler_params=pltpu.CompilerParams(
            dimension_semantics=("parallel",)),
    )(anc_feat, pred_t, cf_t, gt_feat)


def _run_neg_mine(sorted_cf_row, ks, maxcfs):
    smem = pl.BlockSpec(memory_space=pltpu.MemorySpace.SMEM)
    vmem = pl.BlockSpec(memory_space=pltpu.MemorySpace.VMEM)
    return pl.pallas_call(
        _neg_mine_kernel,
        out_shape=jax.ShapeDtypeStruct((4,), jnp.float32),
        in_specs=[smem, smem, vmem],
        out_specs=smem,
    )(ks, maxcfs, sorted_cf_row)


def _pick_tile(A, tile_a):
    """Largest ta (multiple of 128, <= tile_a) that divides ceil(A/128)*128."""
    a128 = ((A + 127) // 128) * 128
    units = a128 // 128
    cap = max(1, int(tile_a) // 128)
    best = 1
    for d in range(1, units + 1):
        if units % d == 0 and d <= cap:
            best = d
    return a128, 128 * best


@functools.partial(jax.jit, static_argnames=(
    "alpha", "jaccard_thr", "mining_ratio", "min_neg", "max_bg_cf",
    "neg_lambda", "tile_a", "pos_cap"))
def ssd_single_class_loss(pred_box_delt, pred_cf, gt_box_wh, anchor_wh, anchor_xy,
                          alpha=1.0, jaccard_thr=0.5, mining_ratio=6,
                          min_neg=10, max_bg_cf=0.5, neg_lambda=1.0,
                          tile_a=1024, pos_cap=128):
    """Returns (loss_l, loss_c) as float32 scalars."""
    A = anchor_xy.shape[0]
    G = gt_box_wh.shape[0]
    gp = max(8, ((G + 7) // 8) * 8)        # tight sublane padding of the GT rows

    # ---- GT features [gp, 8]: xmin, ymin, xmax, ymax, cx, cy, log(w)/VAR_W, log(h)/VAR_H
    gt = gt_box_wh[:, 1:].astype(jnp.float32)
    gw_safe = jnp.maximum(gt[:, 2], 1e-12)   # guard degenerate boxes: keep logs finite
    gh_safe = jnp.maximum(gt[:, 3], 1e-12)
    gt_feat = jnp.stack(
        [gt[:, 0], gt[:, 1], gt[:, 0] + gt[:, 2], gt[:, 1] + gt[:, 3],
         gt[:, 0] + gt[:, 2] / 2.0, gt[:, 1] + gt[:, 3] / 2.0,
         jnp.log(gw_safe) * (1.0 / VAR_W), jnp.log(gh_safe) * (1.0 / VAR_H)],
        axis=1)                                               # [G, 8]
    gt_feat = jnp.pad(gt_feat, ((0, gp - G), (0, 0)))         # zero rows: never positive

    # ---- anchor / prediction features, transposed to lane-dense [*, A]
    A_pad, ta = _pick_tile(A, tile_a)
    pad = A_pad - A

    anc_feat = jnp.concatenate([anchor_xy.astype(jnp.float32).T,
                                anchor_wh.astype(jnp.float32).T], axis=0)    # [8, A]
    pred_t = pred_box_delt.astype(jnp.float32).T                             # [4, A]
    cf_t = pred_cf.astype(jnp.float32).T                                     # [2, A]
    if pad:
        dummy = jnp.array([-1e6, -1e6, -1e6 + 1.0, -1e6 + 1.0, 0.0, 0.0, 1.0, 1.0],
                          jnp.float32).reshape(8, 1)
        anc_feat = jnp.concatenate([anc_feat, jnp.tile(dummy, (1, pad))], axis=1)
        pred_t = jnp.pad(pred_t, ((0, 0), (0, pad)))
        cf_t = jnp.pad(cf_t, ((0, 0), (0, pad)), constant_values=1.0)

    out = _run_main(anc_feat, pred_t, cf_t, gt_feat, jaccard_thr, ta, gp)
    loc_sum, pos_cnt = out[0, :A], out[1, :A]
    pos_cf, neg_cf = out[2, :A], out[3, :A]

    loc_loss = jnp.sum(loc_sum)
    num_pos = jnp.sum(pos_cnt)
    pos_cf_loss = jnp.sum(pos_cf)
    num_neg = jnp.sum((pos_cnt == 0.0).astype(jnp.float32))

    # ---- bounded hard-negative mining: top-k smallest bg CFs, one small kernel
    # handling both branches. Positive-match anchors carry +inf -> land last in
    # the ascending prefix and are rejected by the `< maxcf` tests.
    k_top = min(A, max(int(min_neg), int(mining_ratio) * int(pos_cap)))
    k_pad = ((k_top + 127) // 128) * 128
    smallest = -jax.lax.top_k(-neg_cf, k_top)[0]              # ascending bg cf prefix
    if k_pad > k_top:
        smallest = jnp.pad(smallest, (0, k_pad - k_top), constant_values=jnp.inf)
    smallest = smallest.reshape(1, k_pad)

    kA = jnp.minimum(jnp.maximum(num_pos * float(mining_ratio), float(min_neg)),
                     num_neg)
    # TODO(synk): if num_pos ever exceeds the static pos_cap the mining set is
    # truncated to k_top; raise pos_cap to restore exact reference semantics.
    kA = jnp.minimum(kA, float(k_top)).astype(jnp.int32)
    ks = jnp.stack([kA, jnp.asarray(min(int(min_neg), A), jnp.int32)])
    maxcfs = jnp.array([float(max_bg_cf), jnp.inf], jnp.float32)
    mined = _run_neg_mine(smallest, ks, maxcfs)
    lossA, cntA, lossB, cntB = mined[0], mined[1], mined[2], mined[3]

    negA = jnp.where(cntA > 0, lossA / jnp.maximum(cntA, 1.0) * neg_lambda, 0.0)
    negB = lossB / jnp.maximum(cntB, 1.0) * neg_lambda        # no-positives branch

    has_pos = num_pos > 0
    sp = jnp.maximum(num_pos, 1.0)
    loss_l = jnp.where(has_pos, alpha * loc_loss / sp, 0.0)
    loss_c = jnp.where(has_pos, pos_cf_loss / sp + negA, negB)
    # TODO(synk): regularizedLayers weight-decay term (`reg`) requires a model's
    # conv weights/bias; not part of this synthetic kernel (reg = 0).
    return loss_l, loss_c


# ----------------------------- numpy reference ------------------------------
def _reference(pred_delt, pred_cf, gt_raw, anc_wh, anc_xy,
               alpha=1.0, thr=0.5, ratio=6, min_neg=10, maxcf=0.5, lam=1.0):
    pred_delt = np.asarray(pred_delt, np.float64)
    pred_cf = np.asarray(pred_cf, np.float64)
    anc_wh = np.asarray(anc_wh, np.float64)
    anc_xy = np.asarray(anc_xy, np.float64)
    gt = np.asarray(gt_raw, np.float64)[:, 1:]
    gt_cw = gt.copy()
    gt_cw[:, 0] = gt[:, 0] + gt[:, 2] / 2
    gt_cw[:, 1] = gt[:, 1] + gt[:, 3] / 2
    gt_xy = gt.copy()
    gt_xy[:, 2] = gt[:, 0] + gt[:, 2]
    gt_xy[:, 3] = gt[:, 1] + gt[:, 3]
    ixmin = np.maximum(anc_xy[:, None, 0], gt_xy[None, :, 0])
    iymin = np.maximum(anc_xy[:, None, 1], gt_xy[None, :, 1])
    ixmax = np.minimum(anc_xy[:, None, 2], gt_xy[None, :, 2])
    iymax = np.minimum(anc_xy[:, None, 3], gt_xy[None, :, 3])
    inter = np.clip(ixmax - ixmin, 0, None) * np.clip(iymax - iymin, 0, None)
    area_a = ((anc_xy[:, 2] - anc_xy[:, 0]) * (anc_xy[:, 3] - anc_xy[:, 1]))[:, None]
    area_g = ((gt_xy[:, 2] - gt_xy[:, 0]) * (gt_xy[:, 3] - gt_xy[:, 1]))[None, :]
    iou = inter / (area_a + area_g - inter)
    pos = np.argwhere(iou >= thr)
    neg_idx = np.where(iou.max(axis=1) < thr)[0]
    num_pos = pos.shape[0]
    if num_pos:
        ai, gi = pos[:, 0], pos[:, 1]
        a, g = anc_wh[ai], gt_cw[gi]
        ghat = np.stack([(g[:, 0] - a[:, 0]) / a[:, 2] / VAR_X,
                         (g[:, 1] - a[:, 1]) / a[:, 3] / VAR_Y,
                         np.log(g[:, 2] / a[:, 2]) / VAR_W,
                         np.log(g[:, 3] / a[:, 3]) / VAR_H], axis=1)
        d = np.abs(pred_delt[ai] - ghat)
        loc_loss = np.where(d < 1, 0.5 * d * d, d - 0.5).sum()
        pos_cf = -np.log(pred_cf[ai, 0]).sum()
        negcf = np.sort(pred_cf[neg_idx, 1])
        k = int(min(max(num_pos * ratio, min_neg), negcf.shape[0]))
        mined = negcf[:k]
        mined = mined[mined < maxcf]
        negloss = 0.0 if mined.shape[0] == 0 else (-np.log(mined)).sum() / mined.shape[0] * lam
        return alpha * loc_loss / num_pos, pos_cf / num_pos + negloss
    else:
        negcf = np.sort(pred_cf[:, 1])[:int(min_neg)]
        return 0.0, (-np.log(negcf)).sum() / int(min_neg) * lam


if __name__ == "__main__":
    A = 512                      # number of anchor/default boxes (stand-in for 5376)
    # Deterministic anchor grid: 16x16 centers, two square scales (8 and 12 px).
    xs = (jnp.arange(16, dtype=jnp.float32) + 0.5) * 4.0
    cxg, cyg = jnp.meshgrid(xs, xs, indexing="ij")
    cxg, cyg = cxg.reshape(-1), cyg.reshape(-1)
    acx = jnp.concatenate([cxg, cxg])
    acy = jnp.concatenate([cyg, cyg])
    aw = jnp.concatenate([jnp.full((256,), 8.0), jnp.full((256,), 12.0)])
    ah = aw
    anchor_wh = jnp.stack([acx, acy, aw, ah], axis=1)                    # [512, 4]
    anchor_xy = jnp.stack([acx - aw / 2, acy - ah / 2,
                           acx + aw / 2, acy + ah / 2], axis=1)          # [512, 4]

    # Ground truth: three boxes near anchors 10 / 200 / 400 (guarantees positives).
    sel = jnp.array([10, 200, 400])
    gxmin = anchor_xy[sel, 0] + 0.5
    gymin = anchor_xy[sel, 1] + 0.5
    gw = anchor_wh[sel, 2]
    gh = anchor_wh[sel, 3]
    gt_box_wh = jnp.stack([jnp.zeros(3), gxmin, gymin, gw, gh], axis=1)  # [3, 5]

    key = jax.random.PRNGKey(0)
    k1, k2 = jax.random.split(key)
    pred_cf = jax.nn.softmax(jax.random.normal(k1, (A, 2), jnp.float32), axis=1)
    pred_box_delt = 0.1 * jax.random.normal(k2, (A, 4), jnp.float32)

    loss_l, loss_c = ssd_single_class_loss(pred_box_delt, pred_cf, gt_box_wh,
                                           anchor_wh, anchor_xy, tile_a=256)
    loss_l, loss_c = jax.block_until_ready((loss_l, loss_c))

    ref_l, ref_c = _reference(pred_box_delt, pred_cf, gt_box_wh, anchor_wh, anchor_xy)
    assert np.allclose(float(loss_l), ref_l, rtol=2e-3, atol=1e-4), (float(loss_l), ref_l)
    assert np.allclose(float(loss_c), ref_c, rtol=2e-3, atol=1e-4), (float(loss_c), ref_c)
    print("KERNEL_OK")
</pallas_src>

<mosaic_0001>
module attributes {stable_mosaic.version = 11 : i64} {
  func.func @_neg_mine_kernel(%arg0: memref<2xi32, #tpu.memory_space<smem>>, %arg1: memref<2xf32, #tpu.memory_space<smem>>, %arg2: memref<1x512xf32, #tpu.memory_space<vmem>>, %arg3: memref<4xf32, #tpu.memory_space<smem>>) attributes {dimension_semantics = [], scalar_prefetch = 0 : i64, scratch_operands = 0 : i64, tpu.core_type = #tpu.core_type<tc>} {
    %c0 = arith.constant 0 : index
    %0 = memref.load %arg0[%c0] : memref<2xi32, #tpu.memory_space<smem>>
    %c1 = arith.constant 1 : index
    %1 = memref.load %arg0[%c1] : memref<2xi32, #tpu.memory_space<smem>>
    %c0_0 = arith.constant 0 : index
    %2 = memref.load %arg1[%c0_0] : memref<2xf32, #tpu.memory_space<smem>>
    %c1_1 = arith.constant 1 : index
    %3 = memref.load %arg1[%c1_1] : memref<2xf32, #tpu.memory_space<smem>>
    %c0_2 = arith.constant 0 : index
    %c0_3 = arith.constant 0 : index
    %4 = vector.load %arg2[%c0_2, %c0_3] : memref<1x512xf32, #tpu.memory_space<vmem>>, vector<1x512xf32>
    %5 = tpu.iota {dimensions = array<i32: 1>} : vector<1x512xi32>
    %6 = vector.broadcast %0 : i32 to vector<1x512xi32>
    %7 = arith.cmpi slt, %5, %6 : vector<1x512xi32>
    %8 = vector.broadcast %2 : f32 to vector<1x512xf32>
    %9 = arith.cmpf olt, %4, %8 : vector<1x512xf32>
    %10 = arith.andi %7, %9 : vector<1x512xi1>
    %11 = vector.broadcast %1 : i32 to vector<1x512xi32>
    %12 = arith.cmpi slt, %5, %11 : vector<1x512xi32>
    %13 = vector.broadcast %3 : f32 to vector<1x512xf32>
    %14 = arith.cmpf olt, %4, %13 : vector<1x512xf32>
    %15 = arith.andi %12, %14 : vector<1x512xi1>
    %16 = arith.ori %10, %15 : vector<1x512xi1>
    %cst = arith.constant 1.000000e+00 : f32
    %17 = vector.broadcast %cst : f32 to vector<1x512xf32>
    %18 = arith.select %16, %4, %17 : vector<1x512xi1>, vector<1x512xf32>
    %19 = math.log %18 : vector<1x512xf32>
    %cst_4 = arith.constant 0.000000e+00 : f32
    %20 = vector.broadcast %cst_4 : f32 to vector<1x512xf32>
    %21 = arith.subf %20, %19 : vector<1x512xf32>
    %cst_5 = arith.constant 0.000000e+00 : f32
    %22 = vector.broadcast %cst_5 : f32 to vector<1x512xf32>
    %23 = arith.select %10, %21, %22 : vector<1x512xi1>, vector<1x512xf32>
    %24 = vector.shape_cast %23 : vector<1x512xf32> to vector<1x1x512xf32>
    %cst_6 = arith.constant dense<0.000000e+00> : vector<1xf32>
    %25 = vector.multi_reduction <add>, %24, %cst_6 [1, 2] : vector<1x1x512xf32> to vector<1xf32>
    %26 = vector.shape_cast %25 : vector<1xf32> to vector<1x1x1xf32>
    %27 = vector.extract %26[0, 0, 0] : f32 from vector<1x1x1xf32>
    %c0_7 = arith.constant 0 : index
    %28 = memref.load %arg3[%c0_7] : memref<4xf32, #tpu.memory_space<smem>>
    memref.store %27, %arg3[%c0_7] : memref<4xf32, #tpu.memory_space<smem>>
    %29 = arith.extui %10 : vector<1x512xi1> to vector<1x512xi32>
    %30 = arith.sitofp %29 : vector<1x512xi32> to vector<1x512xf32>
    %31 = vector.shape_cast %30 : vector<1x512xf32> to vector<1x1x512xf32>
    %cst_8 = arith.constant dense<0.000000e+00> : vector<1xf32>
    %32 = vector.multi_reduction <add>, %31, %cst_8 [1, 2] : vector<1x1x512xf32> to vector<1xf32>
    %33 = vector.shape_cast %32 : vector<1xf32> to vector<1x1x1xf32>
    %34 = vector.extract %33[0, 0, 0] : f32 from vector<1x1x1xf32>
    %c1_9 = arith.constant 1 : index
    %35 = memref.load %arg3[%c1_9] : memref<4xf32, #tpu.memory_space<smem>>
    memref.store %34, %arg3[%c1_9] : memref<4xf32, #tpu.memory_space<smem>>
    %cst_10 = arith.constant 0.000000e+00 : f32
    %36 = vector.broadcast %cst_10 : f32 to vector<1x512xf32>
    %37 = arith.select %15, %21, %36 : vector<1x512xi1>, vector<1x512xf32>
    %38 = vector.shape_cast %37 : vector<1x512xf32> to vector<1x1x512xf32>
    %cst_11 = arith.constant dense<0.000000e+00> : vector<1xf32>
    %39 = vector.multi_reduction <add>, %38, %cst_11 [1, 2] : vector<1x1x512xf32> to vector<1xf32>
    %40 = vector.shape_cast %39 : vector<1xf32> to vector<1x1x1xf32>
    %41 = vector.extract %40[0, 0, 0] : f32 from vector<1x1x1xf32>
    %c2 = arith.constant 2 : index
    %42 = memref.load %arg3[%c2] : memref<4xf32, #tpu.memory_space<smem>>
    memref.store %41, %arg3[%c2] : memref<4xf32, #tpu.memory_space<smem>>
    %43 = arith.extui %15 : vector<1x512xi1> to vector<1x512xi32>
    %44 = arith.sitofp %43 : vector<1x512xi32> to vector<1x512xf32>
    %45 = vector.shape_cast %44 : vector<1x512xf32> to vector<1x1x512xf32>
    %cst_12 = arith.constant dense<0.000000e+00> : vector<1xf32>
    %46 = vector.multi_reduction <add>, %45, %cst_12 [1, 2] : vector<1x1x512xf32> to vector<1xf32>
    %47 = vector.shape_cast %46 : vector<1xf32> to vector<1x1x1xf32>
    %48 = vector.extract %47[0, 0, 0] : f32 from vector<1x1x1xf32>
    %c3 = arith.constant 3 : index
    %49 = memref.load %arg3[%c3] : memref<4xf32, #tpu.memory_space<smem>>
    memref.store %48, %arg3[%c3] : memref<4xf32, #tpu.memory_space<smem>>
    return
  }
}

module attributes {stable_mosaic.version = 11 : i64} {
  func.func @_ssd_main_kernel(%arg0: i32, %arg1: memref<8x256xf32, #tpu.memory_space<vmem>>, %arg2: memref<4x256xf32, #tpu.memory_space<vmem>>, %arg3: memref<2x256xf32, #tpu.memory_space<vmem>>, %arg4: memref<8x8xf32, #tpu.memory_space<vmem>>, %arg5: memref<4x256xf32, #tpu.memory_space<vmem>>) attributes {dimension_semantics = [#tpu.dimension_semantics<parallel>], iteration_bounds = array<i64: 2>, scalar_prefetch = 0 : i64, scratch_operands = 0 : i64, tpu.core_type = #tpu.core_type<tc>, window_params = [{transform_indices = @transform_0, window_bounds = array<i64: 8, 256>}, {transform_indices = @transform_1, window_bounds = array<i64: 4, 256>}, {transform_indices = @transform_2, window_bounds = array<i64: 2, 256>}, {pipeline_mode = #tpu.pipeline_mode<synchronous>, transform_indices = @transform_3, window_bounds = array<i64: 8, 8>}, {transform_indices = @transform_4, window_bounds = array<i64: 4, 256>}]} {
    %c0 = arith.constant 0 : index
    %c0_0 = arith.constant 0 : index
    %0 = vector.load %arg1[%c0, %c0_0] : memref<8x256xf32, #tpu.memory_space<vmem>>, vector<1x256xf32>
    %c1 = arith.constant 1 : index
    %c0_1 = arith.constant 0 : index
    %1 = vector.load %arg1[%c1, %c0_1] : memref<8x256xf32, #tpu.memory_space<vmem>>, vector<1x256xf32>
    %c2 = arith.constant 2 : index
    %c0_2 = arith.constant 0 : index
    %2 = vector.load %arg1[%c2, %c0_2] : memref<8x256xf32, #tpu.memory_space<vmem>>, vector<1x256xf32>
    %c3 = arith.constant 3 : index
    %c0_3 = arith.constant 0 : index
    %3 = vector.load %arg1[%c3, %c0_3] : memref<8x256xf32, #tpu.memory_space<vmem>>, vector<1x256xf32>
    %4 = arith.subf %2, %0 : vector<1x256xf32>
    %5 = arith.subf %3, %1 : vector<1x256xf32>
    %6 = arith.mulf %4, %5 : vector<1x256xf32>
    %c0_4 = arith.constant 0 : index
    %c0_5 = arith.constant 0 : index
    %7 = vector.load %arg4[%c0_4, %c0_5] : memref<8x8xf32, #tpu.memory_space<vmem>>, vector<8x1xf32>
    %c0_6 = arith.constant 0 : index
    %c1_7 = arith.constant 1 : index
    %8 = vector.load %arg4[%c0_6, %c1_7] : memref<8x8xf32, #tpu.memory_space<vmem>>, vector<8x1xf32>
    %c0_8 = arith.constant 0 : index
    %c2_9 = arith.constant 2 : index
    %9 = vector.load %arg4[%c0_8, %c2_9] : memref<8x8xf32, #tpu.memory_space<vmem>>, vector<8x1xf32>
    %c0_10 = arith.constant 0 : index
    %c3_11 = arith.constant 3 : index
    %10 = vector.load %arg4[%c0_10, %c3_11] : memref<8x8xf32, #tpu.memory_space<vmem>>, vector<8x1xf32>
    %11 = arith.subf %9, %7 : vector<8x1xf32>
    %12 = arith.subf %10, %8 : vector<8x1xf32>
    %13 = arith.mulf %11, %12 : vector<8x1xf32>
    %14 = vector.broadcast %2 : vector<1x256xf32> to vector<8x256xf32>
    %15 = vector.broadcast %9 : vector<8x1xf32> to vector<8x256xf32>
    %16 = arith.minimumf %14, %15 : vector<8x256xf32>
    %17 = vector.broadcast %0 : vector<1x256xf32> to vector<8x256xf32>
    %18 = vector.broadcast %7 : vector<8x1xf32> to vector<8x256xf32>
    %19 = arith.maximumf %17, %18 : vector<8x256xf32>
    %20 = arith.subf %16, %19 : vector<8x256xf32>
    %cst = arith.constant 0.000000e+00 : f32
    %21 = vector.broadcast %cst : f32 to vector<8x256xf32>
    %22 = arith.maximumf %20, %21 : vector<8x256xf32>
    %23 = vector.broadcast %3 : vector<1x256xf32> to vector<8x256xf32>
    %24 = vector.broadcast %10 : vector<8x1xf32> to vector<8x256xf32>
    %25 = arith.minimumf %23, %24 : vector<8x256xf32>
    %26 = vector.broadcast %1 : vector<1x256xf32> to vector<8x256xf32>
    %27 = vector.broadcast %8 : vector<8x1xf32> to vector<8x256xf32>
    %28 = arith.maximumf %26, %27 : vector<8x256xf32>
    %29 = arith.subf %25, %28 : vector<8x256xf32>
    %cst_12 = arith.constant 0.000000e+00 : f32
    %30 = vector.broadcast %cst_12 : f32 to vector<8x256xf32>
    %31 = arith.maximumf %29, %30 : vector<8x256xf32>
    %32 = arith.mulf %22, %31 : vector<8x256xf32>
    %33 = vector.broadcast %6 : vector<1x256xf32> to vector<8x256xf32>
    %34 = vector.broadcast %13 : vector<8x1xf32> to vector<8x256xf32>
    %35 = arith.addf %33, %34 : vector<8x256xf32>
    %36 = arith.subf %35, %32 : vector<8x256xf32>
    %cst_13 = arith.constant 5.000000e-01 : f32
    %37 = vector.broadcast %cst_13 : f32 to vector<8x256xf32>
    %38 = arith.mulf %37, %36 : vector<8x256xf32>
    %39 = arith.cmpf oge, %32, %38 : vector<8x256xf32>
    %40 = arith.extui %39 : vector<8x256xi1> to vector<8x256xi32>
    %41 = arith.sitofp %40 : vector<8x256xi32> to vector<8x256xf32>
    %cst_14 = arith.constant dense<0.000000e+00> : vector<256xf32>
    %42 = vector.multi_reduction <add>, %41, %cst_14 [0] : vector<8x256xf32> to vector<256xf32>
    %43 = vector.shape_cast %42 : vector<256xf32> to vector<1x256xf32>
    %c0_15 = arith.constant 0 : index
    %c0_16 = arith.constant 0 : index
    %44 = vector.load %arg3[%c0_15, %c0_16] : memref<2x256xf32, #tpu.memory_space<vmem>>, vector<1x256xf32>
    %c1_17 = arith.constant 1 : index
    %c0_18 = arith.constant 0 : index
    %45 = vector.load %arg3[%c1_17, %c0_18] : memref<2x256xf32, #tpu.memory_space<vmem>>, vector<1x256xf32>
    %cst_19 = arith.constant 0.000000e+00 : f32
    %46 = vector.broadcast %cst_19 : f32 to vector<1x256xf32>
    %c0_20 = arith.constant 0 : index
    %c0_21 = arith.constant 0 : index
    %47 = vector.load %arg5[%c0_20, %c0_21] : memref<4x256xf32, #tpu.memory_space<vmem>>, vector<1x256xf32>
    tpu.vector_store %arg5[%c0_20, %c0_21], %46 {strides = array<i32>} : memref<4x256xf32, #tpu.memory_space<vmem>>, vector<1x256xf32>,
    %c1_22 = arith.constant 1 : index
    %c0_23 = arith.constant 0 : index
    %48 = vector.load %arg5[%c1_22, %c0_23] : memref<4x256xf32, #tpu.memory_space<vmem>>, vector<1x256xf32>
    tpu.vector_store %arg5[%c1_22, %c0_23], %43 {strides = array<i32>} : memref<4x256xf32, #tpu.memory_space<vmem>>, vector<1x256xf32>,
    %cst_24 = arith.constant 0.000000e+00 : f32
    %49 = vector.broadcast %cst_24 : f32 to vector<1x256xf32>
    %c2_25 = arith.constant 2 : index
    %c0_26 = arith.constant 0 : index
    %50 = vector.load %arg5[%c2_25, %c0_26] : memref<4x256xf32, #tpu.memory_space<vmem>>, vector<1x256xf32>
    tpu.vector_store %arg5[%c2_25, %c0_26], %49 {strides = array<i32>} : memref<4x256xf32, #tpu.memory_space<vmem>>, vector<1x256xf32>,
    %cst_27 = arith.constant 0.000000e+00 : f32
    %51 = vector.broadcast %cst_27 : f32 to vector<1x256xf32>
    %52 = arith.cmpf oeq, %43, %51 : vector<1x256xf32>
    %cst_28 = arith.constant 0x7F800000 : f32
    %53 = vector.broadcast %cst_28 : f32 to vector<1x256xf32>
    %54 = arith.select %52, %45, %53 : vector<1x256xi1>, vector<1x256xf32>
    %c3_29 = arith.constant 3 : index
    %c0_30 = arith.constant 0 : index
    %55 = vector.load %arg5[%c3_29, %c0_30] : memref<4x256xf32, #tpu.memory_space<vmem>>, vector<1x256xf32>
    tpu.vector_store %arg5[%c3_29, %c0_30], %54 {strides = array<i32>} : memref<4x256xf32, #tpu.memory_space<vmem>>, vector<1x256xf32>,
    %56 = vector.shape_cast %43 : vector<1x256xf32> to vector<1x1x256xf32>
    %cst_31 = arith.constant dense<0.000000e+00> : vector<1xf32>
    %57 = vector.multi_reduction <add>, %56, %cst_31 [1, 2] : vector<1x1x256xf32> to vector<1xf32>
    %58 = vector.shape_cast %57 : vector<1xf32> to vector<1x1x1xf32>
    %59 = vector.extract %58[0, 0, 0] : f32 from vector<1x1x1xf32>
    %cst_32 = arith.constant 0.000000e+00 : f32
    %60 = arith.cmpf ogt, %59, %cst_32 : f32
    %61 = arith.extui %60 : i1 to i32
    %c0_i32 = arith.constant 0 : i32
    %62 = arith.cmpi ne, %61, %c0_i32 : i32
    scf.if %62 {
      %c4 = arith.constant 4 : index
      %c0_33 = arith.constant 0 : index
      %63 = vector.load %arg1[%c4, %c0_33] : memref<8x256xf32, #tpu.memory_space<vmem>>, vector<1x256xf32>
      %c5 = arith.constant 5 : index
      %c0_34 = arith.constant 0 : index
      %64 = vector.load %arg1[%c5, %c0_34] : memref<8x256xf32, #tpu.memory_space<vmem>>, vector<1x256xf32>
      %c6 = arith.constant 6 : index
      %c0_35 = arith.constant 0 : index
      %65 = vector.load %arg1[%c6, %c0_35] : memref<8x256xf32, #tpu.memory_space<vmem>>, vector<1x256xf32>
      %c7 = arith.constant 7 : index
      %c0_36 = arith.constant 0 : index
      %66 = vector.load %arg1[%c7, %c0_36] : memref<8x256xf32, #tpu.memory_space<vmem>>, vector<1x256xf32>
      %cst_37 = arith.constant 1.000000e-01 : f32
      %67 = vector.broadcast %cst_37 : f32 to vector<1x256xf32>
      %68 = arith.mulf %65, %67 : vector<1x256xf32>
      %cst_38 = arith.constant 1.000000e+00 : f32
      %69 = vector.broadcast %cst_38 : f32 to vector<1x256xf32>
      %70 = arith.divf %69, %68 : vector<1x256xf32>
      %cst_39 = arith.constant 1.000000e-01 : f32
      %71 = vector.broadcast %cst_39 : f32 to vector<1x256xf32>
      %72 = arith.mulf %66, %71 : vector<1x256xf32>
      %cst_40 = arith.constant 1.000000e+00 : f32
      %73 = vector.broadcast %cst_40 : f32 to vector<1x256xf32>
      %74 = arith.divf %73, %72 : vector<1x256xf32>
      %75 = math.log %65 : vector<1x256xf32>
      %cst_41 = arith.constant 5.000000e+00 : f32
      %76 = vector.broadcast %cst_41 : f32 to vector<1x256xf32>
      %77 = arith.mulf %75, %76 : vector<1x256xf32>
      %78 = math.log %66 : vector<1x256xf32>
      %cst_42 = arith.constant 5.000000e+00 : f32
      %79 = vector.broadcast %cst_42 : f32 to vector<1x256xf32>
      %80 = arith.mulf %78, %79 : vector<1x256xf32>
      %c0_43 = arith.constant 0 : index
      %c0_44 = arith.constant 0 : index
      %81 = vector.load %arg2[%c0_43, %c0_44] : memref<4x256xf32, #tpu.memory_space<vmem>>, vector<1x256xf32>
      %c1_45 = arith.constant 1 : index
      %c0_46 = arith.constant 0 : index
      %82 = vector.load %arg2[%c1_45, %c0_46] : memref<4x256xf32, #tpu.memory_space<vmem>>, vector<1x256xf32>
      %c2_47 = arith.constant 2 : index
      %c0_48 = arith.constant 0 : index
      %83 = vector.load %arg2[%c2_47, %c0_48] : memref<4x256xf32, #tpu.memory_space<vmem>>, vector<1x256xf32>
      %c3_49 = arith.constant 3 : index
      %c0_50 = arith.constant 0 : index
      %84 = vector.load %arg2[%c3_49, %c0_50] : memref<4x256xf32, #tpu.memory_space<vmem>>, vector<1x256xf32>
      %c0_51 = arith.constant 0 : index
      %c4_52 = arith.constant 4 : index
      %85 = vector.load %arg4[%c0_51, %c4_52] : memref<8x8xf32, #tpu.memory_space<vmem>>, vector<8x1xf32>
      %c0_53 = arith.constant 0 : index
      %c5_54 = arith.constant 5 : index
      %86 = vector.load %arg4[%c0_53, %c5_54] : memref<8x8xf32, #tpu.memory_space<vmem>>, vector<8x1xf32>
      %c0_55 = arith.constant 0 : index
      %c6_56 = arith.constant 6 : index
      %87 = vector.load %arg4[%c0_55, %c6_56] : memref<8x8xf32, #tpu.memory_space<vmem>>, vector<8x1xf32>
      %c0_57 = arith.constant 0 : index
      %c7_58 = arith.constant 7 : index
      %88 = vector.load %arg4[%c0_57, %c7_58] : memref<8x8xf32, #tpu.memory_space<vmem>>, vector<8x1xf32>
      %89 = vector.broadcast %85 : vector<8x1xf32> to vector<8x256xf32>
      %90 = vector.broadcast %63 : vector<1x256xf32> to vector<8x256xf32>
      %91 = arith.subf %89, %90 : vector<8x256xf32>
      %92 = vector.broadcast %70 : vector<1x256xf32> to vector<8x256xf32>
      %93 = arith.mulf %91, %92 : vector<8x256xf32>
      %94 = vector.broadcast %86 : vector<8x1xf32> to vector<8x256xf32>
      %95 = vector.broadcast %64 : vector<1x256xf32> to vector<8x256xf32>
      %96 = arith.subf %94, %95 : vector<8x256xf32>
      %97 = vector.broadcast %74 : vector<1x256xf32> to vector<8x256xf32>
      %98 = arith.mulf %96, %97 : vector<8x256xf32>
      %99 = vector.broadcast %87 : vector<8x1xf32> to vector<8x256xf32>
      %100 = vector.broadcast %77 : vector<1x256xf32> to vector<8x256xf32>
      %101 = arith.subf %99, %100 : vector<8x256xf32>
      %102 = vector.broadcast %88 : vector<8x1xf32> to vector<8x256xf32>
      %103 = vector.broadcast %80 : vector<1x256xf32> to vector<8x256xf32>
      %104 = arith.subf %102, %103 : vector<8x256xf32>
      %105 = vector.broadcast %81 : vector<1x256xf32> to vector<8x256xf32>
      %106 = arith.subf %105, %93 : vector<8x256xf32>
      %107 = math.absf %106 : vector<8x256xf32>
      %cst_59 = arith.constant 1.000000e+00 : f32
      %108 = vector.broadcast %cst_59 : f32 to vector<8x256xf32>
      %109 = arith.minimumf %107, %108 : vector<8x256xf32>
      %cst_60 = arith.constant 5.000000e-01 : f32
      %110 = vector.broadcast %cst_60 : f32 to vector<8x256xf32>
      %111 = arith.mulf %110, %109 : vector<8x256xf32>
      %112 = arith.mulf %111, %109 : vector<8x256xf32>
      %113 = arith.subf %107, %109 : vector<8x256xf32>
      %114 = arith.addf %112, %113 : vector<8x256xf32>
      %115 = vector.broadcast %82 : vector<1x256xf32> to vector<8x256xf32>
      %116 = arith.subf %115, %98 : vector<8x256xf32>
      %117 = math.absf %116 : vector<8x256xf32>
      %cst_61 = arith.constant 1.000000e+00 : f32
      %118 = vector.broadcast %cst_61 : f32 to vector<8x256xf32>
      %119 = arith.minimumf %117, %118 : vector<8x256xf32>
      %cst_62 = arith.constant 5.000000e-01 : f32
      %120 = vector.broadcast %cst_62 : f32 to vector<8x256xf32>
      %121 = arith.mulf %120, %119 : vector<8x256xf32>
      %122 = arith.mulf %121, %119 : vector<8x256xf32>
      %123 = arith.subf %117, %119 : vector<8x256xf32>
      %124 = arith.addf %122, %123 : vector<8x256xf32>
      %125 = arith.addf %114, %124 : vector<8x256xf32>
      %126 = vector.broadcast %83 : vector<1x256xf32> to vector<8x256xf32>
      %127 = arith.subf %126, %101 : vector<8x256xf32>
      %128 = math.absf %127 : vector<8x256xf32>
      %cst_63 = arith.constant 1.000000e+00 : f32
      %129 = vector.broadcast %cst_63 : f32 to vector<8x256xf32>
      %130 = arith.minimumf %128, %129 : vector<8x256xf32>
      %cst_64 = arith.constant 5.000000e-01 : f32
      %131 = vector.broadcast %cst_64 : f32 to vector<8x256xf32>
      %132 = arith.mulf %131, %130 : vector<8x256xf32>
      %133 = arith.mulf %132, %130 : vector<8x256xf32>
      %134 = arith.subf %128, %130 : vector<8x256xf32>
      %135 = arith.addf %133, %134 : vector<8x256xf32>
      %136 = arith.addf %125, %135 : vector<8x256xf32>
      %137 = vector.broadcast %84 : vector<1x256xf32> to vector<8x256xf32>
      %138 = arith.subf %137, %104 : vector<8x256xf32>
      %139 = math.absf %138 : vector<8x256xf32>
      %cst_65 = arith.constant 1.000000e+00 : f32
      %140 = vector.broadcast %cst_65 : f32 to vector<8x256xf32>
      %141 = arith.minimumf %139, %140 : vector<8x256xf32>
      %cst_66 = arith.constant 5.000000e-01 : f32
      %142 = vector.broadcast %cst_66 : f32 to vector<8x256xf32>
      %143 = arith.mulf %142, %141 : vector<8x256xf32>
      %144 = arith.mulf %143, %141 : vector<8x256xf32>
      %145 = arith.subf %139, %141 : vector<8x256xf32>
      %146 = arith.addf %144, %145 : vector<8x256xf32>
      %147 = arith.addf %136, %146 : vector<8x256xf32>
      %148 = arith.mulf %41, %147 : vector<8x256xf32>
      %cst_67 = arith.constant dense<0.000000e+00> : vector<256xf32>
      %149 = vector.multi_reduction <add>, %148, %cst_67 [0] : vector<8x256xf32> to vector<256xf32>
      %150 = vector.shape_cast %149 : vector<256xf32> to vector<1x256xf32>
      %c0_68 = arith.constant 0 : index
      %c0_69 = arith.constant 0 : index
      %151 = vector.load %arg5[%c0_68, %c0_69] : memref<4x256xf32, #tpu.memory_space<vmem>>, vector<1x256xf32>
      tpu.vector_store %arg5[%c0_68, %c0_69], %150 {strides = array<i32>} : memref<4x256xf32, #tpu.memory_space<vmem>>, vector<1x256xf32>,
      %152 = math.log %44 : vector<1x256xf32>
      %cst_70 = arith.constant 0.000000e+00 : f32
      %153 = vector.broadcast %cst_70 : f32 to vector<1x256xf32>
      %154 = arith.subf %153, %152 : vector<1x256xf32>
      %155 = arith.mulf %43, %154 : vector<1x256xf32>
      %c2_71 = arith.constant 2 : index
      %c0_72 = arith.constant 0 : index
      %156 = vector.load %arg5[%c2_71, %c0_72] : memref<4x256xf32, #tpu.memory_space<vmem>>, vector<1x256xf32>
      tpu.vector_store %arg5[%c2_71, %c0_72], %155 {strides = array<i32>} : memref<4x256xf32, #tpu.memory_space<vmem>>, vector<1x256xf32>,
    } else {
    }
    return
  }
  func.func @transform_0(%arg0: i32) -> (i32, i32) {
    %c0_i32 = arith.constant 0 : i32
    %c0_i32_0 = arith.constant 0 : i32
    return %c0_i32, %arg0 : i32, i32
  }
  func.func @transform_1(%arg0: i32) -> (i32, i32) {
    %c0_i32 = arith.constant 0 : i32
    %c0_i32_0 = arith.constant 0 : i32
    return %c0_i32, %arg0 : i32, i32
  }
  func.func @transform_2(%arg0: i32) -> (i32, i32) {
    %c0_i32 = arith.constant 0 : i32
    %c0_i32_0 = arith.constant 0 : i32
    return %c0_i32, %arg0 : i32, i32
  }
  func.func @transform_3(%arg0: i32) -> (i32, i32) {
    %c0_i32 = arith.constant 0 : i32
    %c0_i32_0 = arith.constant 0 : i32
    %c0_i32_1 = arith.constant 0 : i32
    return %c0_i32, %c0_i32_0 : i32, i32
  }
  func.func @transform_4(%arg0: i32) -> (i32, i32) {
    %c0_i32 = arith.constant 0 : i32
    %c0_i32_0 = arith.constant 0 : i32
    return %c0_i32, %arg0 : i32, i32
  }
}

</mosaic_0001>

<bundles_post_ra>
// kernel: neg.3
= control target key start
LH: loop header
LB: loop body
LE: loop exit
PB: predicated region body
PF: predicated region fallthrough
CT: control target
= control target key end

     0   :  { %s24_s0 = inlined_call_operand.vmem [shape: f32[512], index: 0, kind: input, shape index: {}]   ;;  %s25_s1 = inlined_call_operand.vmem [shape: f32[512], index: 1, kind: output, shape index: {}]  }
   0x1   :  { %v2_v0 = vld [vmem:[%s24_s0] sm:$0xf] }
   0x2   :  { %v5_v1 = vxor.u32 2147483648, %v2_v0 }
   0x4   :  { %7 = vst [vmem:[%s25_s1] sm:$0xf] %v5_v1 }

// kernel: ssd_single_class_loss.3
= control target key start
LH: loop header
LB: loop body
LE: loop exit
PB: predicated region body
PF: predicated region fallthrough
CT: control target
= control target key end

     0   :  { %8 = vsyncpa [#allocation3], 0  ;;  %s485_s0 = inlined_call_operand.vmem [shape: s32[2], index: 0, kind: input, shape index: {}]   ;;  %s486_s1 = inlined_call_operand.vmem [shape: f32[2], index: 1, kind: input, shape index: {}]   ;;  %s487_s2 = inlined_call_operand.vmem [shape: f32[1,512], index: 2, kind: input, shape index: {}]   ;;  %s488_s3 = inlined_call_operand.vmem [shape: f32[4], index: 3, kind: output, shape index: {}]  }
   0x1   :  { %9 = vsyncpa [#allocation6], 0 }
   0x2   :  { %10 = vsyncpa [#allocation4], 0  ;;  %s17_s14 = sshll.u32 %s485_s0, 4  ;;  %s27_s17 = sshll.u32 %s486_s1, 4  ;;  %s18_s14 = int_to_ptr.vmem [resolvable:$true] %s17_s14  ;;  %s28_s17 = int_to_ptr.vmem [resolvable:$true] %s27_s17 }
   0x3   :  { %s300_s18 = scalar_lea.vmem %s18_s14, 16  ;;  %p305_p1 = scmp.lt.s32.totalorder %s18_s14, %s18_s14 }
   0x4   :  { %p301_p0 = scmp.ne.s32.totalorder %s18_s14, %s300_s18  ;;  %p306_p2 = scmp.lt.s32.totalorder %s300_s18, %s300_s18 }
   0x6   :  { %p307_p3 = por %p306_p2, %p305_p1 }
   0x8   :  { %p308_p4 = pnand %p307_p3, %p301_p0 }
   0xa   :  { %311 = shalt.err (!%p308_p4)
}
   0xb   :  { %s342_s19 = smov [#allocation2]   ;;  %s312_s20 = scalar_lea.vmem %s28_s17, 16 }
   0xc   :  { %20 = dma.vmem_to_smem %s18_s14, 16, %s342_s19, [#allocation3]  }
   0xd   :  { %p313_p5 = scmp.ne.s32.totalorder %s28_s17, %s312_s20  ;;  %p317_p6 = scmp.lt.s32.totalorder %s28_s17, %s28_s17 }
   0xe   :  { %p318_p7 = scmp.lt.s32.totalorder %s312_s20, %s312_s20 }
  0x10   :  { %p319_p8 = por %p318_p7, %p317_p6 }
  0x12   :  { %p320_p9 = pnand %p319_p8, %p313_p5 }
  0x14   :  { %323 = shalt.err (!%p320_p9)
}
  0x15   :  { %s343_s0 = smov [#allocation5]  }
  0x16   :  { %30 = dma.vmem_to_smem %s28_s17, 16, %s343_s0, [#allocation6]  }
  0x17   :  { %336 = dma.done.wait [#allocation3], 16  }
  0x18   :  { %337 = vsyncadd [#allocation3], 4294967280 }
  0x19   :  { %338 = dma.done.wait [#allocation6], 16  }
  0x1a   :  { %339 = vsyncadd [#allocation6], 4294967280 }
  0x1b   :  { %39 = sfence }
  0x1c   :  { %s40_s1 = sld [smem:[#allocation2]]  ;;  %v45_v0 = vlaneseq  ;;  %s270_s22 = sld [smem:[#allocation5 + $0x1]]  ;;  %v376_v3 = vld [vmem:[%s487_s2] sm:$0xf]  ;;  %v344_v14 = vmov 0   ;;  %v490_v22 = vmov 0 }
  0x1d   :  { %s42_s21 = sld [smem:[#allocation5]]  ;;  %s269_s23 = sld [smem:[#allocation2 + $0x1]]  ;;  %v345_v42 = vmov 0.0  }
  0x1e   :  { %v59_v1 = vshrl.u32 %v45_v0, 7  ;;  %v46_v2 = vand.u32 127, %v45_v0  ;;  %s258_s28 = sshll.u32 %s488_s3, 4  ;;  %s259_s28 = int_to_ptr.vmem [resolvable:$true] %s258_s28 }
  0x1f   :  { %s324_s5 = scalar_lea.vmem %s259_s28, 16  ;;  %p329_p11 = scmp.lt.s32.totalorder %s259_s28, %s259_s28 }
  0x20   :  { %v60_v4 = vsub.s32 0, %v59_v1  ;;  %v64_v6 = vsub.s32 1, %v59_v1  ;;  %v68_v7 = vsub.s32 2, %v59_v1  ;;  %v72_v8 = vsub.s32 3, %v59_v1  ;;  %p325_p10 = scmp.ne.s32.totalorder %s259_s28, %s324_s5  ;;  %p330_p12 = scmp.lt.s32.totalorder %s324_s5, %s324_s5 }
  0x21   :  { %v47_v9 = vadd.s32 128, %v46_v2  ;;  %v48_v10 = vadd.s32 256, %v46_v2  ;;  %v49_v11 = vadd.s32 384, %v46_v2 }
  0x22   :  { %v50_v5 = vstv %s40_s1  ;;  %v87_v13 = vstv %s270_s22  ;;  %v122_v32 = vrot.slane %v376_v3, %v60_v4  ;;  %v126_v34 = vrot.slane %v376_v3, %v64_v6  ;;  %p331_p13 = por %p330_p12, %p329_p11 }
  0x23   :  { %v55_v12 = vstv %s42_s21  ;;  %vm51_vm1 = vcmp.lt.s32.totalorder %v46_v2, %v50_v5  ;;  %v82_v16 = vstv %s269_s23  ;;  %vm88_vm2 = vcmp.lt.f32.partialorder %v376_v3, %v87_v13 }
  0x24   :  { %vm56_vm0 = vcmp.lt.f32.partialorder %v376_v3, %v55_v12  ;;  %vm52_vm3 = vcmp.lt.s32.totalorder %v47_v9, %v50_v5  ;;  %vm53_vm4 = vcmp.lt.s32.totalorder %v48_v10, %v50_v5  ;;  %vm54_vm5 = vcmp.lt.s32.totalorder %v49_v11, %v50_v5  ;;  %p332_p0 = pnand %p331_p13, %p325_p10 }
  0x25   :  { %v57_v15 = vsel %vm56_vm0, 1, %v344_v14  ;;  %v89_v21 = vsel %vm88_vm2, 1, %v344_v14  ;;  %vm83_vm12 = vcmp.lt.s32.totalorder %v46_v2, %v82_v16  ;;  %vm84_vm14 = vcmp.lt.s32.totalorder %v47_v9, %v82_v16 }
  0x26   :  { %v61_v17 = vrot.slane %v57_v15, %v60_v4  ;;  %v65_v18 = vrot.slane %v57_v15, %v64_v6  ;;  %v69_v19 = vrot.slane %v57_v15, %v68_v7  ;;  %v73_v20 = vrot.slane %v57_v15, %v72_v8 }
  0x27   :  { %v93_v23 = vrot.slane %v89_v21, %v60_v4  ;;  %v97_v24 = vrot.slane %v89_v21, %v64_v6  ;;  %v101_v25 = vrot.slane %v89_v21, %v68_v7  ;;  %v105_v26 = vrot.slane %v89_v21, %v72_v8 }
  0x28   :  { %vm74_vm6 = vcmp.ne.s32.totalorder %v61_v17, 0  ;;  %vm75_vm7 = vcmp.ne.s32.totalorder %v65_v18, 0  ;;  %vm76_vm8 = vcmp.ne.s32.totalorder %v69_v19, 0  ;;  %vm77_vm9 = vcmp.ne.s32.totalorder %v73_v20, 0 }
  0x29   :  { %vm381_vm10 = vmand %vm51_vm1, %vm74_vm6  ;;  %vm106_vm15 = vcmp.ne.s32.totalorder %v93_v23, 0  ;;  %vm107_vm0 = vcmp.ne.s32.totalorder %v97_v24, 0  ;;  %vm85_vm2 = vcmp.lt.s32.totalorder %v48_v10, %v82_v16  ;;  %vm108_vm6 = vcmp.ne.s32.totalorder %v101_v25, 0 }
  0x2a   :  { %v491_v22 = vsel %vm381_vm10, 4294967295, %v490_v22  ;;  %vm385_vm11 = vmand %vm52_vm3, %vm75_vm7  ;;  %vm86_vm10 = vcmp.lt.s32.totalorder %v49_v11, %v82_v16  ;;  %vm109_vm3 = vcmp.ne.s32.totalorder %v105_v26, 0  ;;  %v130_v36 = vrot.slane %v376_v3, %v68_v7 }
  0x2b   :  { %vm389_vm13 = vmand %vm53_vm4, %vm76_vm8  ;;  %v134_v37 = vrot.slane %v376_v3, %v72_v8  ;;  %v272_v44 = vsel %vm385_vm11, 1.0, %v345_v42 }
  0x2c   :  { %vm394_vm1 = vmand %vm54_vm5, %vm77_vm9  ;;  %vm506_vm9 = vnez %v491_v22  ;;  %v273_v60 = vsel %vm389_vm13, 1.0, %v345_v42 }
  0x2d   :  { %vm398_vm7 = vmand %vm83_vm12, %vm106_vm15  ;;  %v271_v43 = vsel %vm506_vm9, 1.0, %v345_v42  ;;  %v274_v25 = vsel %vm394_vm1, 1.0, %v345_v42 }
  0x2e   :  { %vm402_vm4 = vmand %vm84_vm14, %vm107_vm0  ;;  %v275_v45 = vsel %vm398_vm7, 1.0, %v345_v42  ;;  %vm159_vm0 = vcmask 1040384  }
  0x2f   :  { %vm407_vm8 = vmand %vm85_vm2, %vm108_vm6  ;;  %v276_v46 = vsel %vm402_vm4, 1.0, %v345_v42  ;;  %v186_v48 = vsel %vm159_vm0, %v271_v43, 0.0  ;;  %v187_v49 = vsel %vm159_vm0, %v272_v44, 0.0  ;;  %v234_v52 = vsel %vm159_vm0, %v275_v45, 0.0 }
  0x30   :  { %vm412_vm5 = vmand %vm86_vm10, %vm109_vm3  ;;  %v235_v53 = vsel %vm159_vm0, %v276_v46, 0.0  ;;  %v277_v56 = vsel %vm407_vm8, 1.0, %v345_v42  ;;  %v188_v61 = vadd.f32 %v187_v49, %v186_v48  ;;  %v189_v21 = vsel %vm159_vm0, %v273_v60, 0.0 }
  0x31   :  { %vm114_vm12 = vmor %vm506_vm9, %vm398_vm7  ;;  %v278_v0 = vsel %vm412_vm5, 1.0, %v345_v42  ;;  %v236_v1 = vadd.f32 %v235_v53, %v234_v52  ;;  %v237_v5 = vsel %vm159_vm0, %v277_v56, 0.0 }
  0x32   :  { %vm115_vm14 = vmor %vm385_vm11, %vm402_vm4  ;;  %v139_v38 = vsel %vm114_vm12, %v122_v32, 1.0  ;;  %v239_v27 = vsel %vm159_vm0, %v278_v0, 0.0  ;;  %v190_v31 = vadd.f32 %v189_v21, %v188_v61  ;;  %v191_v32 = vsel %vm159_vm0, %v274_v25, 0.0 }
  0x33   :  { %vm116_vm10 = vmor %vm389_vm13, %vm407_vm8  ;;  %v140_v39 = vsel %vm115_vm14, %v126_v34, 1.0  ;;  %292 = vlog2.f32 %v139_v38  ;;  %v238_v24 = vadd.f32 %v237_v5, %v236_v1 }
  0x34   :  { %vm117_vm15 = vmor %vm394_vm1, %vm412_vm5  ;;  %v141_v40 = vsel %vm116_vm10, %v130_v36, 1.0  ;;  %294 = vlog2.f32 %v140_v39  ;;  %v192_v35 = vadd.f32 %v191_v32, %v190_v31 }
  0x35   :  { %v142_v41 = vsel %vm117_vm15, %v134_v37, 1.0  ;;  %296 = vlog2.f32 %v141_v40  ;;  %v240_v34 = vadd.f32 %v239_v27, %v238_v24 }
  0x36   :  { %298 = vlog2.f32 %v142_v41 }
  0x3d   :  { %v293_v47 = vpop.eup %292 }
  0x3e   :  { %v295_v50 = vpop.eup %294  ;;  %v144_v51 = vmul.f32 0.6931472, %v293_v47 }
  0x3f   :  { %v297_v54 = vpop.eup %296  ;;  %v146_v55 = vmul.f32 0.6931472, %v295_v50 }
  0x40   :  { %v299_v57 = vpop.eup %298  ;;  %v148_v58 = vmul.f32 0.6931472, %v297_v54  ;;  %v151_v59 = vsub.f32 0.0, %v144_v51 }
  0x41   :  { %v150_v62 = vmul.f32 0.6931472, %v299_v57  ;;  %v152_v63 = vsub.f32 0.0, %v146_v55 }
  0x42   :  { %v153_v2 = vsub.f32 0.0, %v148_v58  ;;  %v204_v3 = vsel %vm398_vm7, %v151_v59, 0.0  ;;  %v155_v4 = vsel %vm506_vm9, %v151_v59, 0.0 }
  0x43   :  { %v154_v6 = vsub.f32 0.0, %v150_v62  ;;  %v205_v7 = vsel %vm402_vm4, %v152_v63, 0.0  ;;  %v208_v8 = vsel %vm159_vm0, %v204_v3, 0.0  ;;  %v156_v9 = vsel %vm385_vm11, %v152_v63, 0.0 }
  0x44   :  { %v206_v10 = vsel %vm407_vm8, %v153_v2, 0.0  ;;  %v209_v11 = vsel %vm159_vm0, %v205_v7, 0.0  ;;  %v157_v12 = vsel %vm389_vm13, %v153_v2, 0.0  ;;  %v160_v13 = vsel %vm159_vm0, %v155_v4, 0.0 }
  0x45   :  { %v207_v14 = vsel %vm412_vm5, %v154_v6, 0.0  ;;  %v210_v15 = vadd.f32 %v209_v11, %v208_v8  ;;  %v211_v16 = vsel %vm159_vm0, %v206_v10, 0.0  ;;  %v158_v17 = vsel %vm394_vm1, %v154_v6, 0.0 }
  0x46   :  { %v213_v18 = vsel %vm159_vm0, %v207_v14, 0.0  ;;  %v161_v19 = vsel %vm159_vm0, %v156_v9, 0.0  ;;  %v163_v20 = vsel %vm159_vm0, %v157_v12, 0.0  ;;  %v165_v26 = vsel %vm159_vm0, %v158_v17, 0.0 }
  0x47   :  { %v212_v22 = vadd.f32 %v211_v16, %v210_v15  ;;  %v162_v23 = vadd.f32 %v161_v19, %v160_v13 }
  0x49   :  { %v214_v28 = vadd.f32 %v213_v18, %v212_v22  ;;  %v164_v30 = vadd.f32 %v163_v20, %v162_v23 }
  0x4b   :  { %215 = vadd.xlane.f32.xlu1 %v214_v28  ;;  %v166_v33 = vadd.f32 %v165_v26, %v164_v30 }
  0x4d   :  { %167 = vadd.xlane.f32.xlu0 %v166_v33 }
  0x4f   :  { %241 = vadd.xlane.f32.xlu1 %v240_v34 }
  0x51   :  { %193 = vadd.xlane.f32.xlu0 %v192_v35 }
  0xd8   :  { %v216_v36 = vpop.xlane.xlu1 %215 }
  0xd9   :  { %v217_v37 = vrot.slane %v216_v36, 4 }
  0xda   :  { %v168_v29 = vpop.xlane.xlu0 %167 }
  0xdb   :  { %v218_v38 = vadd.f32 %v217_v37, %v216_v36  ;;  %v169_v39 = vrot.slane %v168_v29, 4 }
  0xdc   :  { %v242_v40 = vpop.xlane.xlu1 %241 }
  0xdd   :  { %v170_v41 = vadd.f32 %v169_v39, %v168_v29  ;;  %v243_v42 = vrot.slane %v242_v40, 4  ;;  %v219_v43 = vrot.slane %v218_v38, 2 }
  0xde   :  { %v194_v44 = vpop.xlane.xlu0 %193 }
  0xdf   :  { %v171_v45 = vrot.slane %v170_v41, 2  ;;  %v244_v46 = vadd.f32 %v243_v42, %v242_v40  ;;  %v195_v47 = vrot.slane %v194_v44, 4  ;;  %v220_v51 = vadd.f32 %v219_v43, %v218_v38 }
  0xe1   :  { %v245_v48 = vrot.slane %v244_v46, 2  ;;  %v196_v49 = vadd.f32 %v195_v47, %v194_v44  ;;  %v172_v50 = vadd.f32 %v171_v45, %v170_v41  ;;  %v221_v58 = vrot.slane %v220_v51, 1 }
  0xe3   :  { %v246_v52 = vadd.f32 %v245_v48, %v244_v46  ;;  %v197_v53 = vrot.slane %v196_v49, 2  ;;  %v173_v54 = vrot.slane %v172_v50, 1  ;;  %v222_v62 = vadd.f32 %v221_v58, %v220_v51 }
  0xe5   :  { %v198_v55 = vadd.f32 %v197_v53, %v196_v49  ;;  %v174_v56 = vadd.f32 %v173_v54, %v172_v50  ;;  %v247_v57 = vrot.slane %v246_v52, 1 }
  0xe7   :  { %279 = vpush %v174_v56  ;;  %v199_v59 = vrot.slane %v198_v55, 1  ;;  %v248_v61 = vadd.f32 %v247_v57, %v246_v52 }
  0xe9   :  { %v200_v60 = vadd.f32 %v199_v59, %v198_v55 }
  0xeb   :  { %281 = vpush %v200_v60 }
  0xec   :  { %283 = vpush %v222_v62 }
  0xed   :  { %285 = vpush %v248_v61 }
 0x118   :  { %s280_s2 = spop %279 }
 0x119   :  { %177 = sst [smem:[#allocation7]] %s280_s2 }
 0x11c   :  { %s282_s29 = spop %281 }
 0x11d   :  { %203 = sst [smem:[#allocation7 + $0x1]] %s282_s29  ;;  %s284_s30 = spop %283 }
 0x11e   :  { %225 = sst [smem:[#allocation7 + $0x2]] %s284_s30  ;;  %s286_s4 = spop %285 }
 0x11f   :  { %251 = sst [smem:[#allocation7 + $0x3]] %s286_s4 }
 0x120   :  { %335 = shalt.err (!%p332_p0)
}
 0x121   :  { %s346_s6 = smov [#allocation7]  }
 0x122   :  { %261 = dma.smem_to_vmem %s346_s6, 16, %s259_s28, [#allocation4]  }
 0x123   :  { %340 = dma.done.wait [#allocation4], 16  }
 0x124   :  { %341 = vsyncadd [#allocation4], 4294967280 }
 0x125   :  { %265 = sfence }
 0x126   :  { %266 = vsyncpa [#allocation3], 1 }
 0x127   :  { %267 = vsyncpa [#allocation6], 1 }
 0x128   :  { %268 = vsyncpa [#allocation4], 1 }

// kernel: ssd_single_class_loss.2
= control target key start
LH: loop header
LB: loop body
LE: loop exit
PB: predicated region body
PF: predicated region fallthrough
CT: control target
= control target key end

     0   :  { %s963_s15 = smov 0   ;;  %s1102_s0 = inlined_call_operand.vmem [shape: f32[8,512], index: 0, kind: input, shape index: {}]   ;;  %s1103_s1 = inlined_call_operand.vmem [shape: f32[4,512], index: 1, kind: input, shape index: {}]   ;;  %s1104_s2 = inlined_call_operand.vmem [shape: f32[2,512], index: 2, kind: input, shape index: {}]   ;;  %s1105_s3 = inlined_call_operand.vmem [shape: f32[8,8], index: 3, kind: input, shape index: {}]   ;;  %s1106_s4 = inlined_call_operand.vmem [shape: f32[4,512], index: 4, kind: output, shape index: {}]  }
   0x1 LB: > { %s843_s16 = sadd.s32 4294967295, %s924_s15   ;;  %p847_p0 = scmp.ge.s32.totalorder %s924_s15, 1  ;;  %s924_s15 = sphi %s963_s15, %s14_s15  }
   0x2   : > { %p185_p1 = scmp.lt.s32.totalorder %s924_s15, 3 }
   0x4   : > { %p186_p2 = pnand %p847_p0, %p185_p1 }
   0x5   : > { %v255_v0 = vld [vmem:[%s1105_s3] sm:$0xff] (!%p186_p2)  ;;  %s926_s19 = smov (!%p186_p2), 2   ;;  %v927_v1 = vmov (!%p186_p2), 2   ;;  %v928_v2 = vmov (!%p186_p2), 3   ;;  %v929_v3 = vmov (!%p186_p2), 0   ;;  %v930_v4 = vmov (!%p186_p2), 1  }
   0x6   : > { %189 = sbr.rel (%p186_p2) target bundleno = 774 (0x306), region = 36  ;;  %257 = vrot.lane.b32.xlu0 (!%p186_p2), %v255_v0, %s926_s19  ;;  %897 = vset.pattern.permute.xlu1 (!%p186_p2), %v927_v1  ;;  %s931_s20 = smov (!%p186_p2), 127   ;;  %v267_v9 = vlaneseq (!%p186_p2)  ;;  %v932_v11 = vmov (!%p186_p2), 0.0   ;;  %vm449_vm3 = vcmask (!%p186_p2), 1040384  }
   0x7   : > { %278 = vperm.xlu1 (!%p186_p2), %897, %v255_v0   ;;  %899 = vset.pattern.permute.xlu0 (!%p186_p2), %v928_v2  ;;  %s848_s21 = sshll.u32 (!%p186_p2), %s843_s16, 1 }
   0x8   : > { %p222_p3 = scmp.lt.s32.totalorder (!%p186_p2), %s848_s21, 3  ;;  %vm974_vm0 = vcmp.lt.s32.totalorder (!%p186_p2), %v267_v9, 256  ;;  %v1002_v14 = vshrl.u32 (!%p186_p2), %v267_v9, 7 }
   0xa   : > { %v1010_v15 = vsub.s32 (!%p186_p2), 0, %v1002_v14  ;;  %v1013_v16 = vsub.s32 (!%p186_p2), 1, %v1002_v14 }
   0xb   : > { %898 = vset.pattern.permute.xlu1 (!%p186_p2), %v929_v3 }
   0xc   : > { %295 = vperm.xlu1 (!%p186_p2), %898, %v255_v0  }
   0xd   : > { %s1110_s21 = smov (!%p222_p3, %s848_s21), 3 }
   0xe   : > { %s851_s22 = sshll.u32 %s1110_s21, 2  ;;  %s853_s29 = sshll.u32 %s1110_s21, 1 }
   0xf   : > { %s981_s25 = scalar_lea.vmem %s1103_s1, %s851_s22  ;;  %s986_s28 = scalar_lea.vmem %s1106_s4, %s851_s22 }
  0x10   : > { %900 = vset.pattern.permute.xlu1 %v930_v4  ;;  %391 = vst.msk [vmem:[%s986_s28] ss:$4 sm:$0x3] %vm974_vm0, %v932_v11  ;;  %863 = vst.msk [vmem:[%s986_s28 + $0x2] ss:$4 sm:$0x3] %vm974_vm0, %v932_v11  ;;  %s997_s6 = scalar_lea.vmem %s1104_s2, %s853_s29 }
  0x11   : > { %333 = vperm.xlu1 %900, %v255_v0   ;;  %v1000_v12 = vld [vmem:[%s997_s6] ss:$2 sm:$0x3]  ;;  %s849_s7 = sshll.u32 %s1110_s21, 3  ;;  %v933_v4 = vmov 1966171168  }
  0x12   : > { %s1007_s10 = scalar_lea.vmem %s1102_s0, %s849_s7 }
  0x13   : > { %v857_v18 = vld [vmem:[%s1007_s10 + $0x2] ss:$8 sm:$0x3]  ;;  %v245_v19 = vld [vmem:[%s1007_s10] ss:$8 sm:$0x3] }
  0x14   : > { %v856_v20 = vld [vmem:[%s1007_s10 + $0x1] ss:$8 sm:$0x3]  ;;  %v858_v21 = vld [vmem:[%s1007_s10 + $0x3] ss:$8 sm:$0x3]  ;;  %v270_v22 = vrot.slane %v857_v18, %v1010_v15  ;;  %v274_v23 = vrot.slane %v857_v18, %v1013_v16  ;;  %v287_v24 = vrot.slane %v245_v19, %v1010_v15  ;;  %v291_v25 = vrot.slane %v245_v19, %v1013_v16 }
  0x15   : > { %901 = vset.pattern.permute.xlu1 %v927_v1  ;;  %v325_v26 = vrot.slane %v856_v20, %v1010_v15  ;;  %v329_v27 = vrot.slane %v856_v20, %v1013_v16  ;;  %v308_v29 = vrot.slane %v858_v21, %v1010_v15  ;;  %v312_v30 = vrot.slane %v858_v21, %v1013_v16 }
  0x16   : > { %v252_v40 = vsub.f32 %v857_v18, %v245_v19  ;;  %v253_v41 = vsub.f32 %v858_v21, %v856_v20 }
  0x18   : > { %v254_v46 = vmul.f32 %v253_v41, %v252_v40 }
  0x1a   : > { %v348_v51 = vrot.slane %v254_v46, %v1010_v15  ;;  %v352_v52 = vrot.slane %v254_v46, %v1013_v16 }
  0x78   : > { %v258_v5 = vpop.permute.xlu0 %257 }
  0x79   : > { %v260_v6 = vsub.f32 %v255_v0, %v258_v5  ;;  %v396_v5 = vunpack.c.l.s4 %v933_v4 }
  0x7b   : > { %262 = vrot.lane.b32.xlu0 %v260_v6, %s931_s20 }
  0x7f   : > { %316 = vperm.xlu0 %899, %v255_v0  }
  0x83   : > { %902 = vset.pattern.permute.xlu0 %v927_v1 }
  0x86   : > { %v279_v13 = vpop.permute.xlu1 %278 }
  0x87   : > { %v281_v32 = vmin.f32 %v270_v22, %v279_v13  ;;  %v282_v33 = vmin.f32 %v274_v23, %v279_v13  ;;  %v861_v13 = vld [vmem:[%s997_s6 + $0x1] ss:$2 sm:$0x3] }
  0x88   : > { %v420_v23 = vrot.slane %v861_v13, %v1010_v15 }
  0x8b   : > { %v296_v17 = vpop.permute.xlu1 %295 }
  0x8c   : > { %v298_v34 = vmax.f32 %v287_v24, %v296_v17  ;;  %v299_v35 = vmax.f32 %v291_v25, %v296_v17  ;;  %v397_v17 = vunpack.c.0.s8 %v396_v5 }
  0x8e   : > { %v300_v42 = vsub.f32 %v281_v32, %v298_v34  ;;  %v301_v43 = vsub.f32 %v282_v33, %v299_v35  ;;  %v1040_v22 = vsub.s32 %v397_v17, %v1002_v14 }
  0x90   : > { %v334_v28 = vpop.permute.xlu1 %333  ;;  %v302_v47 = vmax.f32 %v300_v42, 0.0  ;;  %v303_v48 = vmax.f32 %v301_v43, 0.0 }
  0x91   : > { %v336_v36 = vmax.f32 %v325_v26, %v334_v28  ;;  %v337_v37 = vmax.f32 %v329_v27, %v334_v28 }
  0xed   : > { %v263_v7 = vpop.permute.xlu0 %262 }
  0xee   : > { %v265_v8 = vmul.f32 %v263_v7, %v260_v6 }
  0xf0   : > { %357 = vperm.xlu1 %901, %v265_v8  }
  0xfe   : > { %v317_v31 = vpop.permute.xlu0 %316 }
  0xff   : > { %v319_v38 = vmin.f32 %v308_v29, %v317_v31  ;;  %v320_v39 = vmin.f32 %v312_v30, %v317_v31 }
 0x101   : > { %v338_v44 = vsub.f32 %v319_v38, %v336_v36  ;;  %v339_v45 = vsub.f32 %v320_v39, %v337_v37 }
 0x103   : > { %v340_v49 = vmax.f32 %v338_v44, 0.0  ;;  %v341_v50 = vmax.f32 %v339_v45, 0.0 }
 0x105   : > { %v342_v54 = vmul.f32 %v340_v49, %v302_v47  ;;  %v343_v55 = vmul.f32 %v341_v50, %v303_v48 }
 0x16f   : > { %v358_v53 = vpop.permute.xlu1 %357 }
 0x170   : > { %v360_v56 = vadd.f32 %v358_v53, %v348_v51  ;;  %v361_v57 = vadd.f32 %v358_v53, %v352_v52 }
 0x172   : > { %v362_v58 = vsub.f32 %v360_v56, %v342_v54  ;;  %v363_v59 = vsub.f32 %v361_v57, %v343_v55 }
 0x174   : > { %v364_v60 = vmul.f32 0.5, %v362_v58  ;;  %v365_v61 = vmul.f32 0.5, %v363_v59 }
 0x176   : > { %vm366_vm1 = vcmp.ge.f32.partialorder %v342_v54, %v364_v60  ;;  %vm367_vm2 = vcmp.ge.f32.partialorder %v343_v55, %v365_v61 }
 0x177   : > { %v1029_v62 = vsel %vm366_vm1, 1.0, %v932_v11  ;;  %v1031_v63 = vsel %vm367_vm2, 1.0, %v932_v11  ;;  %v424_v11 = vrot.slane %v861_v13, %v1013_v16 }
 0x178   : > { %v372_v0 = vrot.slane %v1029_v62, 4  ;;  %v378_v1 = vrot.slane %v1031_v63, 4 }
 0x17a   : > { %v373_v2 = vadd.f32 %v1029_v62, %v372_v0  ;;  %v379_v3 = vadd.f32 %v1031_v63, %v378_v1 }
 0x17c   : > { %v374_v6 = vrot.slane %v373_v2, 2  ;;  %v380_v7 = vrot.slane %v379_v3, 2 }
 0x17e   : > { %v375_v8 = vadd.f32 %v374_v6, %v373_v2  ;;  %v381_v9 = vadd.f32 %v380_v7, %v379_v3 }
 0x180   : > { %v376_v18 = vrot.slane %v375_v8, 1  ;;  %v382_v19 = vrot.slane %v381_v9, 1 }
 0x182   : > { %v377_v20 = vadd.f32 %v376_v18, %v375_v8  ;;  %v383_v21 = vadd.f32 %v382_v19, %v381_v9 }
 0x184   : > { %vm415_vm4 = vcmp.eq.f32.partialorder %v383_v21, 0.0  ;;  %v450_v24 = vsel %vm449_vm3, %v377_v20, 0.0  ;;  %v451_v25 = vsel %vm449_vm3, %v383_v21, 0.0  ;;  %v394_v26 = vcombine.low %v377_v20, %v383_v21 }
 0x185   : > { %v428_v27 = vsel %vm415_vm4, %v424_v11, inf  ;;  %v452_v28 = vadd.f32 %v451_v25, %v450_v24  ;;  %vm414_vm5 = vcmp.eq.f32.partialorder %v377_v20, 0.0 }
 0x186   : > { %v401_v29 = vrot.slane %v394_v26, %v1040_v22  ;;  %v427_v30 = vsel %vm414_vm5, %v420_v23, inf }
 0x187   : > { %453 = vadd.xlane.f32.xlu0 %v452_v28  ;;  %v431_v31 = vcombine.low %v427_v30, %v428_v27 }
 0x188   : > { %v408_v32 = vrot.slane %v401_v29, %v1040_v22 }
 0x189   : > { %v438_v14 = vrot.slane %v431_v31, %v1040_v22 }
 0x18a   : > { %862 = vst.msk [vmem:[%s986_s28 + $0x1] ss:$4 sm:$0x3] %vm974_vm0, %v408_v32 }
 0x18b   : > { %v445_v33 = vrot.slane %v438_v14, %v1040_v22 }
 0x18d   : > { %864 = vst.msk [vmem:[%s986_s28 + $0x3] ss:$4 sm:$0x3] %vm974_vm0, %v445_v33 }
 0x214   : > { %v454_v34 = vpop.xlane.xlu0 %453 }
 0x215   : > { %v455_v35 = vrot.slane %v454_v34, 4 }
 0x217   : > { %v456_v36 = vadd.f32 %v455_v35, %v454_v34 }
 0x219   : > { %v457_v37 = vrot.slane %v456_v36, 2 }
 0x21b   : > { %v458_v38 = vadd.f32 %v457_v37, %v456_v36 }
 0x21d   : > { %v459_v39 = vrot.slane %v458_v38, 1 }
 0x21f   : > { %v460_v40 = vadd.f32 %v459_v39, %v458_v38 }
 0x221   : > { %875 = vpush %v460_v40 }
 0x252   : > { %s876_s11 = spop %875 }
 0x253   : > { %p462_p4 = scmp.gt.f32.partialorder %s876_s11, 0.0 }
 0x254   : > { %v493_v41 = vld [vmem:[%s1105_s3] sm:$0xff] (%p462_p4)  ;;  %v934_v42 = vmov (%p462_p4), 4   ;;  %v935_v43 = vmov (%p462_p4), 6   ;;  %v936_v44 = vmov (%p462_p4), 5   ;;  %v937_v45 = vmov (%p462_p4), 7  }
 0x255   : > { %465 = sbr.rel (!%p462_p4) target bundleno = 774 (0x306), region = 40  ;;  %903 = vset.pattern.permute.xlu0 (%p462_p4), %v934_v42  ;;  %905 = vset.pattern.permute.xlu1 (%p462_p4), %v935_v43  ;;  %908 = vlog2.f32 (%p462_p4), %v1000_v12  ;;  %v867_v12 = vld [vmem:[%s1007_s10 + $0x6] ss:$8 sm:$0x3] (%p462_p4) }
 0x256   : > { %496 = vperm.xlu0 (%p462_p4), %903, %v493_v41   ;;  %556 = vperm.xlu1 (%p462_p4), %905, %v493_v41   ;;  %910 = vlog2.f32 (%p462_p4), %v867_v12  ;;  %v868_v56 = vld [vmem:[%s1007_s10 + $0x7] ss:$8 sm:$0x3] (%p462_p4)  ;;  %v474_v57 = vmul.f32 (%p462_p4), 0.1, %v867_v12 }
 0x257   : > { %912 = vlog2.f32 (%p462_p4), %v868_v56  ;;  %v477_v59 = vmul.f32 (%p462_p4), 0.1, %v868_v56  ;;  %v865_v1 = vld [vmem:[%s1007_s10 + $0x4] ss:$8 sm:$0x3] (%p462_p4) }
 0x258   : > { %914 = vrcp.f32 (%p462_p4), %v474_v57  ;;  %v870_v4 = vld [vmem:[%s981_s25 + $0x2] ss:$4 sm:$0x3] (%p462_p4)  ;;  %v486_v5 = vld [vmem:[%s981_s25] ss:$4 sm:$0x3] (%p462_p4)  ;;  %v503_v6 = vrot.slane (%p462_p4), %v865_v1, %v1010_v15  ;;  %v507_v7 = vrot.slane (%p462_p4), %v865_v1, %v1013_v16 }
 0x259   : > { %916 = vrcp.f32 (%p462_p4), %v477_v59  ;;  %v866_v13 = vld [vmem:[%s1007_s10 + $0x5] ss:$8 sm:$0x3] (%p462_p4)  ;;  %v645_v11 = vrot.slane (%p462_p4), %v870_v4, %v1010_v15  ;;  %v593_v24 = vrot.slane (%p462_p4), %v486_v5, %v1010_v15  ;;  %v597_v25 = vrot.slane (%p462_p4), %v486_v5, %v1013_v16  ;;  %v871_v33 = vld [vmem:[%s981_s25 + $0x3] ss:$4 sm:$0x3] (%p462_p4) }
 0x25a   : > { %904 = vset.pattern.permute.xlu0 (%p462_p4), %v936_v44  ;;  %906 = vset.pattern.permute.xlu1 (%p462_p4), %v937_v45  ;;  %v533_v27 = vrot.slane (%p462_p4), %v866_v13, %v1010_v15  ;;  %v537_v28 = vrot.slane (%p462_p4), %v866_v13, %v1013_v16  ;;  %v672_v44 = vrot.slane (%p462_p4), %v871_v33, %v1010_v15 }
 0x25b   : > { %526 = vperm.xlu0 (%p462_p4), %904, %v493_v41   ;;  %573 = vperm.xlu1 (%p462_p4), %906, %v493_v41  }
 0x25f   : > { %907 = vset.pattern.permute.xlu0 %v937_v45  ;;  %v909_v46 = vpop.eup %908  ;;  %v676_v45 = vrot.slane %v871_v33, %v1013_v16 }
 0x260   : > { %v729_v47 = vmul.f32 0.6931472, %v909_v46  ;;  %v911_v58 = vpop.eup %910 }
 0x261   : > { %v481_v60 = vmul.f32 0.6931472, %v911_v58  ;;  %v913_v61 = vpop.eup %912 }
 0x262   : > { %v730_v48 = vsub.f32 0.0, %v729_v47  ;;  %v484_v2 = vmul.f32 0.6931472, %v913_v61  ;;  %v915_v3 = vpop.eup %914 }
 0x263   : > { %v482_v0 = vmul.f32 5.0, %v481_v60  ;;  %v516_v18 = vrot.slane %v915_v3, %v1010_v15  ;;  %v520_v19 = vrot.slane %v915_v3, %v1013_v16  ;;  %v917_v29 = vpop.eup %916 }
 0x264   : > { %v735_v49 = vrot.slane %v730_v48, %v1010_v15  ;;  %v739_v50 = vrot.slane %v730_v48, %v1013_v16  ;;  %v485_v17 = vmul.f32 5.0, %v484_v2  ;;  %v546_v42 = vrot.slane %v917_v29, %v1010_v15 }
 0x265   : > { %v563_v8 = vrot.slane %v482_v0, %v1010_v15  ;;  %v567_v9 = vrot.slane %v482_v0, %v1013_v16  ;;  %v550_v43 = vrot.slane %v917_v29, %v1013_v16 }
 0x266   : > { %v742_v51 = vmul.f32 %v735_v49, %v377_v20  ;;  %v743_v52 = vmul.f32 %v739_v50, %v383_v21  ;;  %v649_v20 = vrot.slane %v870_v4, %v1013_v16  ;;  %v869_v21 = vld [vmem:[%s981_s25 + $0x1] ss:$4 sm:$0x3]  ;;  %v580_v36 = vrot.slane %v485_v17, %v1010_v15 }
 0x267   : > { %v618_v34 = vrot.slane %v869_v21, %v1010_v15  ;;  %v622_v35 = vrot.slane %v869_v21, %v1013_v16  ;;  %v584_v37 = vrot.slane %v485_v17, %v1013_v16 }
 0x268   : > { %v746_v53 = vcombine.low %v742_v51, %v743_v52 }
 0x26a   : > { %v753_v54 = vrot.slane %v746_v53, %v1040_v22 }
 0x26c   : > { %v760_v55 = vrot.slane %v753_v54, %v1040_v22 }
 0x26e   : > { %872 = vst.msk [vmem:[%s986_s28 + $0x2] ss:$4 sm:$0x3] %vm974_vm0, %v760_v55 }
 0x2d5   : > { %v497_v23 = vpop.permute.xlu0 %496  ;;  %v557_v26 = vpop.permute.xlu1 %556 }
 0x2d6   : > { %v510_v30 = vsub.f32 %v497_v23, %v503_v6  ;;  %v511_v31 = vsub.f32 %v497_v23, %v507_v7  ;;  %v570_v32 = vsub.f32 %v557_v26, %v563_v8  ;;  %v571_v14 = vsub.f32 %v557_v26, %v567_v9 }
 0x2d8   : > { %v523_v38 = vmul.f32 %v516_v18, %v510_v30  ;;  %v524_v39 = vmul.f32 %v520_v19, %v511_v31  ;;  %v652_v40 = vsub.f32 %v645_v11, %v570_v32  ;;  %v653_v41 = vsub.f32 %v649_v20, %v571_v14 }
 0x2da   : > { %v600_v46 = vsub.f32 %v593_v24, %v523_v38  ;;  %v601_v47 = vsub.f32 %v597_v25, %v524_v39  ;;  %v654_v48 = vand.u32 2147483647, %v652_v40  ;;  %v655_v49 = vand.u32 2147483647, %v653_v41  ;;  %v527_v50 = vpop.permute.xlu0 %526  ;;  %v574_v51 = vpop.permute.xlu1 %573 }
 0x2db   : > { %v540_v52 = vsub.f32 %v527_v50, %v533_v27  ;;  %v541_v53 = vsub.f32 %v527_v50, %v537_v28  ;;  %v587_v54 = vsub.f32 %v574_v51, %v580_v36  ;;  %v588_v55 = vsub.f32 %v574_v51, %v584_v37 }
 0x2dc   : > { %v602_v12 = vand.u32 2147483647, %v600_v46  ;;  %v603_v56 = vand.u32 2147483647, %v601_v47  ;;  %v656_v57 = vmin.f32 %v654_v48, 1.0  ;;  %v657_v58 = vmin.f32 %v655_v49, 1.0 }
 0x2dd   : > { %v553_v59 = vmul.f32 %v546_v42, %v540_v52  ;;  %v554_v60 = vmul.f32 %v550_v43, %v541_v53  ;;  %v679_v0 = vsub.f32 %v672_v44, %v587_v54  ;;  %v680_v16 = vsub.f32 %v676_v45, %v588_v55 }
 0x2de   : > { %v604_v61 = vmin.f32 %v602_v12, 1.0  ;;  %v605_v15 = vmin.f32 %v603_v56, 1.0  ;;  %v658_v7 = vmul.f32 0.5, %v656_v57  ;;  %v659_v8 = vmul.f32 0.5, %v657_v58 }
 0x2df   : > { %v625_v1 = vsub.f32 %v618_v34, %v553_v59  ;;  %v626_v2 = vsub.f32 %v622_v35, %v554_v60  ;;  %v681_v9 = vand.u32 2147483647, %v679_v0  ;;  %v682_v13 = vand.u32 2147483647, %v680_v16 }
 0x2e0   : > { %v606_v3 = vmul.f32 0.5, %v604_v61  ;;  %v607_v4 = vmul.f32 0.5, %v605_v15  ;;  %v662_v17 = vsub.f32 %v654_v48, %v656_v57  ;;  %v663_v18 = vsub.f32 %v655_v49, %v657_v58 }
 0x2e1   : > { %v627_v5 = vand.u32 2147483647, %v625_v1  ;;  %v628_v6 = vand.u32 2147483647, %v626_v2  ;;  %v683_v23 = vmin.f32 %v681_v9, 1.0  ;;  %v684_v24 = vmin.f32 %v682_v13, 1.0 }
 0x2e2   : > { %v608_v20 = vmul.f32 %v606_v3, %v604_v61  ;;  %v609_v21 = vmul.f32 %v607_v4, %v605_v15  ;;  %v610_v25 = vsub.f32 %v602_v12, %v604_v61  ;;  %v611_v26 = vsub.f32 %v603_v56, %v605_v15 }
 0x2e3   : > { %v629_v19 = vmin.f32 %v627_v5, 1.0  ;;  %v630_v11 = vmin.f32 %v628_v6, 1.0  ;;  %v660_v29 = vmul.f32 %v658_v7, %v656_v57  ;;  %v661_v30 = vmul.f32 %v659_v8, %v657_v58 }
 0x2e4   : > { %v685_v31 = vmul.f32 0.5, %v683_v23  ;;  %v686_v32 = vmul.f32 0.5, %v684_v24  ;;  %v612_v36 = vadd.f32 %v610_v25, %v608_v20  ;;  %v613_v37 = vadd.f32 %v611_v26, %v609_v21 }
 0x2e5   : > { %v631_v27 = vmul.f32 0.5, %v629_v19  ;;  %v632_v28 = vmul.f32 0.5, %v630_v11  ;;  %v635_v34 = vsub.f32 %v627_v5, %v629_v19  ;;  %v636_v35 = vsub.f32 %v628_v6, %v630_v11 }
 0x2e6   : > { %v689_v38 = vsub.f32 %v681_v9, %v683_v23  ;;  %v690_v39 = vsub.f32 %v682_v13, %v684_v24  ;;  %v687_v42 = vmul.f32 %v685_v31, %v683_v23  ;;  %v688_v43 = vmul.f32 %v686_v32, %v684_v24 }
 0x2e7   : > { %v633_v14 = vmul.f32 %v631_v27, %v629_v19  ;;  %v634_v33 = vmul.f32 %v632_v28, %v630_v11  ;;  %v664_v44 = vadd.f32 %v662_v17, %v660_v29  ;;  %v665_v45 = vadd.f32 %v663_v18, %v661_v30 }
 0x2e8   : > { %v691_v50 = vadd.f32 %v689_v38, %v687_v42  ;;  %v692_v51 = vadd.f32 %v690_v39, %v688_v43 }
 0x2e9   : > { %v637_v40 = vadd.f32 %v635_v34, %v633_v14  ;;  %v638_v41 = vadd.f32 %v636_v35, %v634_v33 }
 0x2eb   : > { %v639_v46 = vadd.f32 %v637_v40, %v612_v36  ;;  %v640_v47 = vadd.f32 %v638_v41, %v613_v37 }
 0x2ed   : > { %v666_v48 = vadd.f32 %v664_v44, %v639_v46  ;;  %v667_v49 = vadd.f32 %v665_v45, %v640_v47 }
 0x2ef   : > { %v693_v52 = vadd.f32 %v691_v50, %v666_v48  ;;  %v694_v53 = vadd.f32 %v692_v51, %v667_v49 }
 0x2f1   : > { %v695_v54 = vmul.f32 %v1029_v62, %v693_v52  ;;  %v696_v55 = vmul.f32 %v1031_v63, %v694_v53 }
 0x2f3   : > { %v697_v12 = vrot.slane %v695_v54, 4  ;;  %v703_v56 = vrot.slane %v696_v55, 4 }
 0x2f5   : > { %v698_v57 = vadd.f32 %v697_v12, %v695_v54  ;;  %v704_v58 = vadd.f32 %v703_v56, %v696_v55 }
 0x2f7   : > { %v699_v59 = vrot.slane %v698_v57, 2  ;;  %v705_v60 = vrot.slane %v704_v58, 2 }
 0x2f9   : > { %v700_v61 = vadd.f32 %v699_v59, %v698_v57  ;;  %v706_v15 = vadd.f32 %v705_v60, %v704_v58 }
 0x2fb   : > { %v701_v0 = vrot.slane %v700_v61, 1  ;;  %v707_v16 = vrot.slane %v706_v15, 1 }
 0x2fd   : > { %v702_v1 = vadd.f32 %v701_v0, %v700_v61  ;;  %v708_v2 = vadd.f32 %v707_v16, %v706_v15 }
 0x2ff   : > { %v711_v3 = vcombine.low %v702_v1, %v708_v2 }
 0x301   : > { %v718_v4 = vrot.slane %v711_v3, %v1040_v22 }
 0x303   : > { %v725_v62 = vrot.slane %v718_v4, %v1040_v22 }
 0x305   : > { %727 = vst.msk [vmem:[%s986_s28] ss:$4 sm:$0x3] %vm974_vm0, %v725_v62 }
 0x306 PF: > { %s14_s15 = sadd.s32 1, %s924_s15  }
 0x307   : > { %p11_p5 = scmp.ge.s32.totalorder %s14_s15, 4  }
 0x309   :  { %13 = sbr.rel (!%p11_p5) target bundleno = 1 (0x1), region = 90 }

</bundles_post_ra>
